<compile_context>
chip_gen: v5e
topology: v5e:2x2
jax: 0.10.0
libtpu: 0.0.40
codegen_flags: <defaults>
</compile_context>

<pallas_src>
import functools
import math

import jax
import jax.numpy as jnp
from jax import lax
from jax.experimental import pallas as pl
from jax.experimental.pallas import tpu as pltpu

_LANES = 128


def _round_up(x, m):
    return ((x + m - 1) // m) * m


def _default_num_cores():
    # 2 TensorCores per chip only on v7x; on single-TC chips (v5e/v6e) a parallel axis
    # of size 2 is just extra grid-step overhead, so gate it.
    try:
        kind = jax.devices()[0].device_kind.lower()
    except Exception:
        return 1
    return 2 if "v7" in kind else 1


def _sed_loss_kernel(pred_ref, true_ref, w_ref, out_ref, *, smoothing,
                     full_rows, rem_lanes, row_tile, n_inner, needs_mask):
    i = pl.program_id(1)

    @pl.when(i == 0)
    def _init():
        out_ref[...] = jnp.zeros_like(out_ref)

    x = pred_ref[...].astype(jnp.float32)              # (row_tile, 128)
    z = true_ref[...].astype(jnp.float32)
    z = z * (1.0 - smoothing) + 0.5 * smoothing        # label smoothing

    # Numerically stable BCE-with-logits (unweighted); the 2 transcendentals
    # (exp, log1p) ride the EUP slot.
    base = jnp.maximum(x, 0.0) - x * z + jnp.log1p(jnp.exp(-jnp.abs(x)))

    if needs_mask:
        # Zero padded / out-of-range elements.  Valid iff global row < full_rows, or
        # it is the single partial row and lane < rem_lanes.  (No rid*128+lid product.)
        c = pl.program_id(0)
        base_row = (c * n_inner + i) * row_tile
        rid = lax.broadcasted_iota(jnp.int32, base.shape, 0) + base_row
        if rem_lanes:
            lid = lax.broadcasted_iota(jnp.int32, base.shape, 1)
            valid = (rid < full_rows) | ((rid == full_rows) & (lid < rem_lanes))
        else:
            valid = rid < full_rows
        base = jnp.where(valid, base, 0.0)

    # Tree-reduce over chunks (VPU adds over the leading axis), then apply the periodic
    # weight tile ONCE per step (weight pattern is identical for every chunk).
    w_rows = w_ref.shape[0]
    chunks = row_tile // w_rows
    if chunks > 1:
        reduced = jnp.sum(base.reshape(chunks, w_rows, _LANES), axis=0)
    else:
        reduced = base
    out_ref[0] = out_ref[0] + w_ref[...] * reduced     # tiny resident accumulator


def sed_loss(y_pred, y_true, weights, smoothing=0.1, *,
             max_row_tile=2048, num_cores=None):
    """y_pred, y_true: (..., C) logits / labels.  weights: (C,).  Returns scalar mean loss (f32)."""
    assert y_pred.shape == y_true.shape
    C = y_pred.shape[-1]
    assert weights.shape == (C,)
    total = int(y_pred.size)

    if num_cores is None:
        num_cores = _default_num_cores()
    num_cores = max(1, int(num_cores))

    w_scaled = weights.astype(jnp.float32) * (1.0 / float(total))   # fold mean divisor

    # Lane-dense weight period: flattened element e has class e % C; the per-row lane
    # pattern repeats every P = C / gcd(C, 128) rows.  W_rows = lcm(P, 8) keeps the
    # resident tile sublane-aligned.  (For very large C this tile grows; still resident.)
    P = C // math.gcd(C, _LANES)
    W_rows = (P * 8) // math.gcd(P, 8)

    full_rows, rem = divmod(total, _LANES)
    R = full_rows + (1 if rem else 0)

    cap = max(W_rows, (max_row_tile // W_rows) * W_rows)
    rows_per_core = pl.cdiv(R, num_cores)
    row_tile = min(cap, _round_up(max(rows_per_core, 1), W_rows))
    assert row_tile % W_rows == 0 and row_tile % 8 == 0

    # Lane-dense view of the data.  Free reshape in the common case (total % 128 == 0
    # and at least one full row block); otherwise a small pad copy.
    R_store = max(R, row_tile)
    pad = R_store * _LANES - total

    def to_lane_dense(a):
        flat = a.reshape(-1)
        if pad:
            flat = jnp.pad(flat, (0, pad))
        return flat.reshape(R_store, _LANES)

    pred2 = to_lane_dense(y_pred)
    true2 = to_lane_dense(y_true)

    num_blocks = pl.cdiv(R_store, row_tile)
    num_cores = min(num_cores, num_blocks)
    n_inner = pl.cdiv(num_blocks, num_cores)

    coverage = num_cores * n_inner * row_tile * _LANES
    needs_mask = coverage != total

    last_block = num_blocks - 1
    if num_cores * n_inner == num_blocks:
        data_map = lambda c, i: (c * n_inner + i, 0)
    else:
        # Clamp fully-out-of-range block indices (they re-read the last block; the
        # iota mask zeroes their contribution).
        data_map = lambda c, i: (
            jnp.where(c * n_inner + i < num_blocks, c * n_inner + i, last_block), 0)

    data_spec = pl.BlockSpec((row_tile, _LANES), data_map)
    w_spec = pl.BlockSpec((W_rows, _LANES), lambda c, i: (0, 0))   # resident, DMA'd once

    lane_idx = (jnp.arange(W_rows * _LANES, dtype=jnp.int32) % C).reshape(W_rows, _LANES)
    w_tile = w_scaled[lane_idx]                                    # (W_rows, 128)

    kernel = functools.partial(
        _sed_loss_kernel,
        smoothing=float(smoothing),
        full_rows=full_rows,
        rem_lanes=rem,
        row_tile=row_tile,
        n_inner=n_inner,
        needs_mask=bool(needs_mask),
    )

    partials = pl.pallas_call(
        kernel,
        out_shape=jax.ShapeDtypeStruct((num_cores, W_rows, _LANES), jnp.float32),
        grid_spec=pltpu.PrefetchScalarGridSpec(
            num_scalar_prefetch=0,
            grid=(num_cores, n_inner),
            in_specs=[data_spec, data_spec, w_spec],
            out_specs=pl.BlockSpec((1, W_rows, _LANES), lambda c, i: (c, 0, 0)),
        ),
        compiler_params=pltpu.CompilerParams(
            dimension_semantics=("parallel", "arbitrary"),
            vmem_limit_bytes=32 * 1024 * 1024,
        ),
    )(pred2, true2, w_tile)

    # Tiny epilogue reduce (num_cores * W_rows * 128 elements; 1/N already folded in).
    return jnp.sum(partials)


def sed_loss_ref(y_pred, y_true, weights, smoothing=0.1):
    """Pure-JAX reference (matches F.binary_cross_entropy_with_logits with weight, mean)."""
    x = y_pred.astype(jnp.float32)
    z = y_true.astype(jnp.float32) * (1.0 - smoothing) + 0.5 * smoothing
    w = weights.astype(jnp.float32)
    loss = w * (jnp.maximum(x, 0.0) - x * z + jnp.log1p(jnp.exp(-jnp.abs(x))))
    return jnp.mean(loss)


def _check(B, C, seed, smoothing=0.1, **kw):
    k1, k2 = jax.random.split(jax.random.PRNGKey(seed))
    y_pred = jax.random.normal(k1, (B, C), dtype=jnp.float32) * 2.0
    y_true = (jax.random.uniform(k2, (B, C)) > 0.5).astype(jnp.float32)
    weights = jnp.linspace(0.5, 2.0, C, dtype=jnp.float32)
    out = jax.block_until_ready(sed_loss(y_pred, y_true, weights, smoothing=smoothing, **kw))
    ref = sed_loss_ref(y_pred, y_true, weights, smoothing=smoothing)
    assert jnp.allclose(out, ref, rtol=1e-5, atol=1e-6), (B, C, float(out), float(ref))


if __name__ == "__main__":
    # Primary case (matches the module's typical use): batch=16, num_classes=8.
    _check(16, 8, seed=0)
    # Multi-step accumulation along the 'arbitrary' axis, no-padding fast path.
    _check(512, 8, seed=1, max_row_tile=8)
    # Class count that does not divide 128 -> periodic resident weight tile + tail mask.
    _check(6, 5, seed=2)
    # Two-core grid with a clamped (masked) tail block -- exercises the v7x path on any chip.
    _check(640, 8, seed=3, max_row_tile=8, num_cores=2)
    print("KERNEL_OK")
</pallas_src>

<mosaic_0001>
module attributes {stable_mosaic.version = 11 : i64} {
  func.func @_sed_loss_kernel(%arg0: i32, %arg1: i32, %arg2: memref<8x128xf32, #tpu.memory_space<vmem>>, %arg3: memref<8x128xf32, #tpu.memory_space<vmem>>, %arg4: memref<8x128xf32, #tpu.memory_space<vmem>>, %arg5: memref<1x8x128xf32, #tpu.memory_space<vmem>>) attributes {dimension_semantics = [#tpu.dimension_semantics<parallel>, #tpu.dimension_semantics<arbitrary>], iteration_bounds = array<i64: 1, 1>, scalar_prefetch = 0 : i64, scratch_operands = 0 : i64, tpu.core_type = #tpu.core_type<tc>, window_params = [{transform_indices = @transform_0, window_bounds = array<i64: 8, 128>}, {transform_indices = @transform_1, window_bounds = array<i64: 8, 128>}, {pipeline_mode = #tpu.pipeline_mode<synchronous>, transform_indices = @transform_2, window_bounds = array<i64: 8, 128>}, {transform_indices = @transform_3, window_bounds = array<i64: 1, 8, 128>}]} {
    %c0_i32 = arith.constant 0 : i32
    %0 = arith.cmpi eq, %arg1, %c0_i32 : i32
    %1 = arith.extui %0 : i1 to i32
    %c0_i32_0 = arith.constant 0 : i32
    %2 = arith.cmpi ne, %1, %c0_i32_0 : i32
    scf.if %2 {
      %cst_17 = arith.constant 0.000000e+00 : f32
      %37 = vector.broadcast %cst_17 : f32 to vector<1x8x128xf32>
      %c0_18 = arith.constant 0 : index
      %c0_19 = arith.constant 0 : index
      %c0_20 = arith.constant 0 : index
      %38 = vector.load %arg5[%c0_18, %c0_19, %c0_20] : memref<1x8x128xf32, #tpu.memory_space<vmem>>, vector<1x8x128xf32>
      tpu.vector_store %arg5[%c0_18, %c0_19, %c0_20], %37 {strides = array<i32>} : memref<1x8x128xf32, #tpu.memory_space<vmem>>, vector<1x8x128xf32>,
    } else {
    }
    %c0 = arith.constant 0 : index
    %c0_1 = arith.constant 0 : index
    %3 = vector.load %arg2[%c0, %c0_1] : memref<8x128xf32, #tpu.memory_space<vmem>>, vector<8x128xf32>
    %c0_2 = arith.constant 0 : index
    %c0_3 = arith.constant 0 : index
    %4 = vector.load %arg3[%c0_2, %c0_3] : memref<8x128xf32, #tpu.memory_space<vmem>>, vector<8x128xf32>
    %cst = arith.constant 0.899999976 : f32
    %5 = vector.broadcast %cst : f32 to vector<8x128xf32>
    %6 = arith.mulf %4, %5 : vector<8x128xf32>
    %cst_4 = arith.constant 5.000000e-02 : f32
    %7 = vector.broadcast %cst_4 : f32 to vector<8x128xf32>
    %8 = arith.addf %6, %7 : vector<8x128xf32>
    %cst_5 = arith.constant 0.000000e+00 : f32
    %9 = vector.broadcast %cst_5 : f32 to vector<8x128xf32>
    %10 = arith.maximumf %3, %9 : vector<8x128xf32>
    %11 = arith.mulf %3, %8 : vector<8x128xf32>
    %12 = arith.subf %10, %11 : vector<8x128xf32>
    %13 = math.absf %3 : vector<8x128xf32>
    %cst_6 = arith.constant 0.000000e+00 : f32
    %14 = vector.broadcast %cst_6 : f32 to vector<8x128xf32>
    %15 = arith.subf %14, %13 : vector<8x128xf32>
    %16 = math.exp %15 : vector<8x128xf32>
    %17 = math.log1p %16 : vector<8x128xf32>
    %18 = arith.addf %12, %17 : vector<8x128xf32>
    %c1_i32 = arith.constant 1 : i32
    %19 = arith.muli %arg0, %c1_i32 : i32
    %20 = arith.addi %19, %arg1 : i32
    %c8_i32 = arith.constant 8 : i32
    %21 = arith.muli %20, %c8_i32 : i32
    %22 = tpu.iota {dimensions = array<i32: 0>} : vector<8x128xi32>
    %23 = vector.broadcast %21 : i32 to vector<8x128xi32>
    %24 = arith.addi %22, %23 : vector<8x128xi32>
    %c1_i32_7 = arith.constant 1 : i32
    %25 = vector.broadcast %c1_i32_7 : i32 to vector<8x128xi32>
    %26 = arith.cmpi slt, %24, %25 : vector<8x128xi32>
    %cst_8 = arith.constant 0.000000e+00 : f32
    %27 = vector.broadcast %cst_8 : f32 to vector<8x128xf32>
    %28 = arith.select %26, %18, %27 : vector<8x128xi1>, vector<8x128xf32>
    %c0_9 = arith.constant 0 : index
    %c0_10 = arith.constant 0 : index
    %c0_11 = arith.constant 0 : index
    %29 = vector.load %arg5[%c0_9, %c0_10, %c0_11] : memref<1x8x128xf32, #tpu.memory_space<vmem>>, vector<1x8x128xf32>
    %30 = vector.shape_cast %29 : vector<1x8x128xf32> to vector<8x128xf32>
    %c0_12 = arith.constant 0 : index
    %c0_13 = arith.constant 0 : index
    %31 = vector.load %arg4[%c0_12, %c0_13] : memref<8x128xf32, #tpu.memory_space<vmem>>, vector<8x128xf32>
    %32 = arith.mulf %31, %28 : vector<8x128xf32>
    %33 = arith.addf %30, %32 : vector<8x128xf32>
    %c0_14 = arith.constant 0 : index
    %c0_15 = arith.constant 0 : index
    %c0_16 = arith.constant 0 : index
    %34 = vector.load %arg5[%c0_14, %c0_15, %c0_16] : memref<1x8x128xf32, #tpu.memory_space<vmem>>, vector<1x8x128xf32>
    %35 = vector.shape_cast %34 : vector<1x8x128xf32> to vector<8x128xf32>
    %36 = vector.shape_cast %33 : vector<8x128xf32> to vector<1x8x128xf32>
    tpu.vector_store %arg5[%c0_14, %c0_15, %c0_16], %36 {strides = array<i32>} : memref<1x8x128xf32, #tpu.memory_space<vmem>>, vector<1x8x128xf32>,
    return
  }
  func.func @transform_0(%arg0: i32, %arg1: i32) -> (i32, i32) {
    %c1_i32 = arith.constant 1 : i32
    %0 = arith.muli %arg0, %c1_i32 : i32
    %1 = arith.addi %0, %arg1 : i32
    %c0_i32 = arith.constant 0 : i32
    %c0_i32_0 = arith.constant 0 : i32
    return %1, %c0_i32 : i32, i32
  }
  func.func @transform_1(%arg0: i32, %arg1: i32) -> (i32, i32) {
    %c1_i32 = arith.constant 1 : i32
    %0 = arith.muli %arg0, %c1_i32 : i32
    %1 = arith.addi %0, %arg1 : i32
    %c0_i32 = arith.constant 0 : i32
    %c0_i32_0 = arith.constant 0 : i32
    return %1, %c0_i32 : i32, i32
  }
  func.func @transform_2(%arg0: i32, %arg1: i32) -> (i32, i32) {
    %c0_i32 = arith.constant 0 : i32
    %c0_i32_0 = arith.constant 0 : i32
    %c0_i32_1 = arith.constant 0 : i32
    return %c0_i32, %c0_i32_0 : i32, i32
  }
  func.func @transform_3(%arg0: i32, %arg1: i32) -> (i32, i32, i32) {
    %c0_i32 = arith.constant 0 : i32
    %c0_i32_0 = arith.constant 0 : i32
    %c0_i32_1 = arith.constant 0 : i32
    return %arg0, %c0_i32, %c0_i32_0 : i32, i32, i32
  }
}

</mosaic_0001>

<bundles_post_ra>
// kernel: tpu_custom_call.1
= control target key start
LH: loop header
LB: loop body
LE: loop exit
PB: predicated region body
PF: predicated region fallthrough
CT: control target
= control target key end

     0   :  { %8 = vsyncpa [#allocation3], 0  ;;  %s268_s0 = inlined_call_operand.hbm [shape: f32[8,128], index: 0, kind: input, shape index: {}]   ;;  %s269_s1 = inlined_call_operand.hbm [shape: f32[8,128], index: 1, kind: input, shape index: {}]   ;;  %s270_s2 = inlined_call_operand.hbm [shape: f32[8,128], index: 2, kind: input, shape index: {}]   ;;  %s271_s3 = inlined_call_operand.hbm [shape: f32[1,8,128], index: 3, kind: output, shape index: {}]  }
   0x1   :  { %9 = vsyncpa [#allocation6], 0  ;;  %s33_s14 = sshll.u32 %s269_s1, 4  ;;  %s34_s14 = int_to_ptr.hbm [resolvable:$true] %s33_s14 }
   0x2   :  { %10 = vsyncpa [#allocation4], 0  ;;  %s232_s15 = smov [#allocation5]   ;;  %s19_s19 = sshll.u32 %s268_s0, 4  ;;  %s20_s19 = int_to_ptr.hbm [resolvable:$true] %s19_s19 }
   0x3   :  { %s35_s16 = sshll.u32 %s232_s15, 4  ;;  %s233_s20 = smov [#allocation2]   ;;  %s36_s16 = int_to_ptr.vmem [resolvable:$true] %s35_s16 }
   0x4   :  { %38 = dma.hbm_to_vmem [thread:$0]  %s34_s14, 128, %s36_s16, [#allocation6]  }
   0x5   :  { %s21_s21 = sshll.u32 %s233_s20, 4  ;;  %s44_s24 = sshll.u32 %s270_s2, 4  ;;  %s22_s21 = int_to_ptr.vmem [resolvable:$true] %s21_s21  ;;  %s45_s24 = int_to_ptr.hbm [resolvable:$true] %s44_s24 }
   0x6   :  { %24 = dma.hbm_to_vmem [thread:$0]  %s20_s19, 128, %s22_s21, [#allocation3]  }
   0x7   :  { %s234_s1 = smov [#allocation7]  }
   0x8   :  { %s46_s25 = sshll.u32 %s234_s1, 4  ;;  %s47_s25 = int_to_ptr.vmem [resolvable:$true] %s46_s25 }
   0x9   :  { %49 = dma.hbm_to_vmem [thread:$0]  %s45_s24, 128, %s47_s25, [#allocation6]  }
   0xa   :  { %226 = dma.done.wait [#allocation3], 128  }
   0xb   :  { %227 = vsyncadd [#allocation3], 4294967168 }
   0xc   :  { %228 = dma.done.wait [#allocation6], 256  }
   0xd   :  { %229 = vsyncadd [#allocation6], 4294967040  ;;  %v69_v0 = vld [vmem:[#allocation2] sm:$0xff]  ;;  %v70_v4 = vld [vmem:[#allocation5] sm:$0xff]  ;;  %v92_v11 = vlaneseq  ;;  %s235_s0 = smov [#allocation8]   ;;  %s110_s28 = sshll.u32 %s271_s3, 4  ;;  %s111_s28 = int_to_ptr.hbm [resolvable:$true] %s110_s28 }
   0xe   :  { %v76_v1 = vand.u32 2147483647, %v69_v0  ;;  %v71_v5 = vmul.f32 0.9, %v70_v4  ;;  %v73_v12 = vmax.f32 %v69_v0, 0.0  ;;  %v99_v22 = vld [vmem:[#allocation7] sm:$0xff] }
   0xf   :  { %v93_v16 = vshrl.u32 %v92_v11, 7  ;;  %s108_s2 = sshll.u32 %s235_s0, 4  ;;  %s109_s2 = int_to_ptr.vmem [resolvable:$true] %s108_s2 }
  0x10   :  { %v77_v2 = vsub.f32 0.0, %v76_v1  ;;  %v72_v7 = vadd.f32 0.05, %v71_v5 }
  0x11   :  { %vm96_vm1 = vcmp.lt.s32.totalorder %v93_v16, 1 }
  0x12   :  { %v78_v3 = vmul.f32 1.442695, %v77_v2  ;;  %v74_v13 = vmul.f32 %v72_v7, %v69_v0 }
  0x14   :  { %126 = vpow2.f32 %v78_v3  ;;  %v75_v18 = vsub.f32 %v73_v12, %v74_v13 }
  0x1a   :  { %v127_v6 = vpop.eup %126 }
  0x1b   :  { %v80_v8 = vadd.f32 1.0, %v127_v6  ;;  %v83_v9 = vmul.f32 -0.5, %v127_v6  ;;  %v86_v14 = vand.u32 2147483647, %v127_v6 }
  0x1d   :  { %128 = vlog2.f32 %v80_v8  ;;  %v84_v10 = vadd.f32 1.0, %v83_v9  ;;  %vm87_vm0 = vcmp.lt.f32.partialorder %v86_v14, 0.0004427343 }
  0x1f   :  { %v85_v15 = vmul.f32 %v127_v6, %v84_v10 }
  0x23   :  { %v129_v17 = vpop.eup %128 }
  0x24   :  { %v82_v19 = vmul.f32 0.6931472, %v129_v17 }
  0x26   :  { %v88_v20 = vsel %vm87_vm0, %v85_v15, %v82_v19 }
  0x27   :  { %v89_v21 = vadd.f32 %v88_v20, %v75_v18 }
  0x29   :  { %v97_v23 = vsel %vm96_vm1, %v89_v21, 0.0 }
  0x2a   :  { %v100_v24 = vmul.f32 %v99_v22, %v97_v23 }
  0x2c   :  { %102 = vst [vmem:[#allocation8] sm:$0xff] %v100_v24 }
  0x2d   :  { %113 = dma.vmem_to_hbm [thread:$0]  %s109_s2, 128, %s111_s28, [#allocation4]  }
  0x2e   :  { %230 = dma.done.wait [#allocation4], 128  }
  0x2f   :  { %231 = vsyncadd [#allocation4], 4294967168 }
  0x30   :  { %118 = vsyncpa [#allocation3], 1 }
  0x31   :  { %119 = vsyncpa [#allocation6], 1 }
  0x32   :  { %120 = vsyncpa [#allocation4], 1 }

</bundles_post_ra>
